<compile_context>
chip_gen: v5e
topology: v5e:2x2
jax: 0.10.0
libtpu: 0.0.40
codegen_flags: <defaults>
</compile_context>

<pallas_src>
import functools

import jax
import jax.numpy as jnp
from jax.experimental import pallas as pl
from jax.experimental.pallas import tpu as pltpu


def _round_up(x: int, m: int) -> int:
    return (x + m - 1) // m * m


def _ffwd_kernel(x_ref, w1_ref, b1_ref, w2_ref, b2_ref, o_ref, acc_ref):
    # x_ref:  (TM, E_pad)   bf16
    # w1_ref: (E_pad, TK)   bf16   (chunk of w1^T along hidden dim)
    # b1_ref: (1, TK)       f32
    # w2_ref: (TK, E_pad)   bf16   (chunk of w2^T along hidden dim)
    # b2_ref: (1, E_pad)    f32
    # o_ref:  (TM, E_pad)   out dtype
    # acc_ref:(TM, E_pad)   f32 VMEM accumulator (persists across the F grid axis)
    j = pl.program_id(1)

    @pl.when(j == 0)
    def _():
        acc_ref[...] = jnp.zeros_like(acc_ref)

    # relu(linear1) on this hidden-dim chunk (elementwise per chunk -> exact).
    h = jnp.dot(x_ref[...], w1_ref[...], preferred_element_type=jnp.float32)
    h = jnp.maximum(h + b1_ref[...], 0.0)
    # Partial contribution of this hidden chunk to linear2; f32 accumulate.
    acc_ref[...] += jnp.dot(h.astype(w2_ref.dtype), w2_ref[...],
                            preferred_element_type=jnp.float32)

    @pl.when(j == pl.num_programs(1) - 1)
    def _():
        # Bias2 + relu(linear2) applied exactly once, on the completed accumulator.
        y = jnp.maximum(acc_ref[...] + b2_ref[...], 0.0)
        # TODO(synk): dropout is identity here (eval-mode semantics); training-mode
        # dropout would need pltpu.prng_* and cannot match torch's RNG stream anyway.
        o_ref[...] = y.astype(o_ref.dtype)


def prepare_params(w1, b1, w2, b2):
    """One-time layout prep OUTSIDE the per-call path:
    transpose nn.Linear weights to (E,F)/(F,E), pad feature dims to multiples of 128,
    cast weights to bf16 (biases stay f32)."""
    F, E = w1.shape
    E_pad = _round_up(E, 128)
    F_pad = _round_up(F, 128)
    w1_t = jnp.pad(w1.T.astype(jnp.bfloat16), ((0, E_pad - E), (0, F_pad - F)))
    b1_p = jnp.pad(b1.astype(jnp.float32), (0, F_pad - F)).reshape(1, F_pad)
    w2_t = jnp.pad(w2.T.astype(jnp.bfloat16), ((0, F_pad - F), (0, E_pad - E)))
    b2_p = jnp.pad(b2.astype(jnp.float32), (0, E_pad - E)).reshape(1, E_pad)
    return w1_t, b1_p, w2_t, b2_p


@functools.partial(jax.jit, static_argnames=("tile_m",))
def feed_forward(x, w1_t, b1, w2_t, b2, *, tile_m=None):
    """x: (B, S, E). Pre-prepared params from prepare_params(). Returns (B, S, E)."""
    B, S, E = x.shape
    E_pad, F_pad = w1_t.shape
    rows = B * S

    # --- M tile: multiple of 8 (f32 sublane), prefer 128+ so the pipeline has work. ---
    if tile_m is None:
        if rows >= 512:
            tile_m = 512
        elif rows >= 256:
            tile_m = 256
        elif rows >= 128:
            tile_m = 128
        else:
            tile_m = _round_up(rows, 8)
    rows_pad = _round_up(rows, tile_m)

    # --- F (hidden) tile: 128-aligned, divides F_pad. ---
    tk = 128
    for cand in (512, 256, 128):
        if F_pad % cand == 0:
            tk = cand
            break

    # --- Pad + cast activations (bf16 matmul operands). ---
    x2d = x.reshape(rows, E).astype(jnp.bfloat16)
    x2d = jnp.pad(x2d, ((0, rows_pad - rows), (0, E_pad - E)))

    grid = (rows_pad // tile_m, F_pad // tk)

    # --- Explicit VMEM budget (double-buffered inputs/outputs + f32 accumulator). ---
    out_itemsize = jnp.dtype(x.dtype).itemsize
    vmem_bytes = (
        2 * tile_m * E_pad * 2          # x tile (bf16, double-buffered)
        + 2 * (E_pad * tk) * 2          # w1^T chunk
        + 2 * (tk * E_pad) * 2          # w2^T chunk
        + 2 * (tk + E_pad) * 4          # biases
        + tile_m * E_pad * 4            # f32 accumulator
        + 2 * tile_m * E_pad * out_itemsize  # output tile
    )
    vmem_limit = min(max(int(vmem_bytes * 1.5) + (4 << 20), 16 << 20), 64 << 20)

    cost = pl.CostEstimate(
        flops=4 * rows_pad * E_pad * F_pad,
        transcendentals=0,
        bytes_accessed=(rows_pad * E_pad * 2
                        + 2 * E_pad * F_pad * 2
                        + (F_pad + E_pad) * 4
                        + rows_pad * E_pad * out_itemsize),
    )

    out2d = pl.pallas_call(
        _ffwd_kernel,
        out_shape=jax.ShapeDtypeStruct((rows_pad, E_pad), x.dtype),
        grid_spec=pltpu.PrefetchScalarGridSpec(
            num_scalar_prefetch=0,
            grid=grid,
            in_specs=[
                pl.BlockSpec((tile_m, E_pad), lambda i, j: (i, 0)),  # x rows tile
                pl.BlockSpec((E_pad, tk), lambda i, j: (0, j)),      # w1^T chunk
                pl.BlockSpec((1, tk), lambda i, j: (0, j)),          # b1 chunk
                pl.BlockSpec((tk, E_pad), lambda i, j: (j, 0)),      # w2^T chunk
                pl.BlockSpec((1, E_pad), lambda i, j: (0, 0)),       # b2
            ],
            out_specs=pl.BlockSpec((tile_m, E_pad), lambda i, j: (i, 0)),
            scratch_shapes=[pltpu.VMEM((tile_m, E_pad), jnp.float32)],
        ),
        compiler_params=pltpu.CompilerParams(
            dimension_semantics=("parallel", "arbitrary"),
            vmem_limit_bytes=vmem_limit,
        ),
        cost_estimate=cost,
    )(x2d, w1_t, b1, w2_t, b2)

    return out2d[:rows, :E].reshape(B, S, E)


def init_params(key, embed_dim, ffwd_dim):
    """Deterministic init mirroring nn.Linear shapes: W (out, in), b (out,)."""
    k1, k2, k3, k4 = jax.random.split(key, 4)
    lim1 = 1.0 / (embed_dim ** 0.5)
    lim2 = 1.0 / (ffwd_dim ** 0.5)
    w1 = jax.random.uniform(k1, (ffwd_dim, embed_dim), jnp.float32, -lim1, lim1)
    b1 = jax.random.uniform(k2, (ffwd_dim,), jnp.float32, -lim1, lim1)
    w2 = jax.random.uniform(k3, (embed_dim, ffwd_dim), jnp.float32, -lim2, lim2)
    b2 = jax.random.uniform(k4, (embed_dim,), jnp.float32, -lim2, lim2)
    return w1, b1, w2, b2


if __name__ == "__main__":
    key = jax.random.PRNGKey(0)
    batch, seq, embed_dim, ffwd_dim = 2, 8, 32, 64

    kx, kp = jax.random.split(key)
    x = jax.random.normal(kx, (batch, seq, embed_dim), jnp.float32)
    w1, b1, w2, b2 = init_params(kp, embed_dim, ffwd_dim)

    # One-time layout/dtype prep (outside the jitted per-call path).
    w1_t, b1_p, w2_t, b2_p = prepare_params(w1, b1, w2, b2)

    out = feed_forward(x, w1_t, b1_p, w2_t, b2_p)
    out = jax.block_until_ready(out)

    # Pure-JAX f32 reference (eval-mode dropout = identity). bf16 operands in the
    # kernel mean ~1e-3 relative error, so compare with a loosened tolerance.
    h_ref = jnp.maximum(x @ w1.T + b1, 0.0)
    y_ref = jnp.maximum(h_ref @ w2.T + b2, 0.0)
    assert out.shape == (batch, seq, embed_dim)
    assert jnp.allclose(out, y_ref, atol=2e-2, rtol=2e-2), (
        float(jnp.max(jnp.abs(out - y_ref))))

    print("KERNEL_OK")
</pallas_src>

<mosaic_0001>
module attributes {stable_mosaic.version = 11 : i64} {
  func.func @_ffwd_kernel(%arg0: i32, %arg1: i32, %arg2: memref<16x128xbf16, #tpu.memory_space<vmem>>, %arg3: memref<128x128xbf16, #tpu.memory_space<vmem>>, %arg4: memref<1x128xf32, #tpu.memory_space<vmem>>, %arg5: memref<128x128xbf16, #tpu.memory_space<vmem>>, %arg6: memref<1x128xf32, #tpu.memory_space<vmem>>, %arg7: memref<16x128xf32, #tpu.memory_space<vmem>>, %arg8: memref<16x128xf32, #tpu.memory_space<vmem>>) attributes {dimension_semantics = [#tpu.dimension_semantics<parallel>, #tpu.dimension_semantics<arbitrary>], iteration_bounds = array<i64: 1, 1>, scalar_prefetch = 0 : i64, scratch_operands = 1 : i64, tpu.core_type = #tpu.core_type<tc>, window_params = [{transform_indices = @transform_0, window_bounds = array<i64: 16, 128>}, {transform_indices = @transform_1, window_bounds = array<i64: 128, 128>}, {transform_indices = @transform_2, window_bounds = array<i64: 1, 128>}, {transform_indices = @transform_3, window_bounds = array<i64: 128, 128>}, {pipeline_mode = #tpu.pipeline_mode<synchronous>, transform_indices = @transform_4, window_bounds = array<i64: 1, 128>}, {transform_indices = @transform_5, window_bounds = array<i64: 16, 128>}]} {
    %c0_i32 = arith.constant 0 : i32
    %0 = arith.cmpi eq, %arg1, %c0_i32 : i32
    %1 = arith.extui %0 : i1 to i32
    %c0_i32_0 = arith.constant 0 : i32
    %2 = arith.cmpi ne, %1, %c0_i32_0 : i32
    scf.if %2 {
      %cst_16 = arith.constant 0.000000e+00 : f32
      %20 = vector.broadcast %cst_16 : f32 to vector<16x128xf32>
      %c0_17 = arith.constant 0 : index
      %c0_18 = arith.constant 0 : index
      %21 = vector.load %arg8[%c0_17, %c0_18] : memref<16x128xf32, #tpu.memory_space<vmem>>, vector<16x128xf32>
      tpu.vector_store %arg8[%c0_17, %c0_18], %20 {strides = array<i32>} : memref<16x128xf32, #tpu.memory_space<vmem>>, vector<16x128xf32>,
    } else {
    }
    %c0 = arith.constant 0 : index
    %c0_1 = arith.constant 0 : index
    %3 = vector.load %arg2[%c0, %c0_1] : memref<16x128xbf16, #tpu.memory_space<vmem>>, vector<16x128xbf16>
    %c0_2 = arith.constant 0 : index
    %c0_3 = arith.constant 0 : index
    %4 = vector.load %arg3[%c0_2, %c0_3] : memref<128x128xbf16, #tpu.memory_space<vmem>>, vector<128x128xbf16>
    %cst = arith.constant dense<0.000000e+00> : vector<16x128xf32>
    %5 = tpu.matmul %3, %4, %cst {dimension_numbers = #tpu.dot_dimension_numbers<[1], [0], [0], [1], [0, 0, 1, 1], [], []>} : vector<16x128xbf16>, vector<128x128xbf16>, vector<16x128xf32> -> vector<16x128xf32>
    %c0_4 = arith.constant 0 : index
    %c0_5 = arith.constant 0 : index
    %6 = vector.load %arg4[%c0_4, %c0_5] : memref<1x128xf32, #tpu.memory_space<vmem>>, vector<1x128xf32>
    %7 = vector.broadcast %6 : vector<1x128xf32> to vector<16x128xf32>
    %8 = arith.addf %5, %7 : vector<16x128xf32>
    %cst_6 = arith.constant 0.000000e+00 : f32
    %9 = vector.broadcast %cst_6 : f32 to vector<16x128xf32>
    %10 = arith.maximumf %8, %9 : vector<16x128xf32>
    %c0_7 = arith.constant 0 : index
    %c0_8 = arith.constant 0 : index
    %11 = vector.load %arg8[%c0_7, %c0_8] : memref<16x128xf32, #tpu.memory_space<vmem>>, vector<16x128xf32>
    %12 = arith.truncf %10 : vector<16x128xf32> to vector<16x128xbf16>
    %c0_9 = arith.constant 0 : index
    %c0_10 = arith.constant 0 : index
    %13 = vector.load %arg5[%c0_9, %c0_10] : memref<128x128xbf16, #tpu.memory_space<vmem>>, vector<128x128xbf16>
    %cst_11 = arith.constant dense<0.000000e+00> : vector<16x128xf32>
    %14 = tpu.matmul %12, %13, %cst_11 {dimension_numbers = #tpu.dot_dimension_numbers<[1], [0], [0], [1], [0, 0, 1, 1], [], []>} : vector<16x128xbf16>, vector<128x128xbf16>, vector<16x128xf32> -> vector<16x128xf32>
    %15 = arith.addf %11, %14 : vector<16x128xf32>
    %c0_12 = arith.constant 0 : index
    %c0_13 = arith.constant 0 : index
    %16 = vector.load %arg8[%c0_12, %c0_13] : memref<16x128xf32, #tpu.memory_space<vmem>>, vector<16x128xf32>
    tpu.vector_store %arg8[%c0_12, %c0_13], %15 {strides = array<i32>} : memref<16x128xf32, #tpu.memory_space<vmem>>, vector<16x128xf32>,
    %c0_i32_14 = arith.constant 0 : i32
    %17 = arith.cmpi eq, %arg1, %c0_i32_14 : i32
    %18 = arith.extui %17 : i1 to i32
    %c0_i32_15 = arith.constant 0 : i32
    %19 = arith.cmpi ne, %18, %c0_i32_15 : i32
    scf.if %19 {
      %c0_16 = arith.constant 0 : index
      %c0_17 = arith.constant 0 : index
      %20 = vector.load %arg8[%c0_16, %c0_17] : memref<16x128xf32, #tpu.memory_space<vmem>>, vector<16x128xf32>
      %c0_18 = arith.constant 0 : index
      %c0_19 = arith.constant 0 : index
      %21 = vector.load %arg6[%c0_18, %c0_19] : memref<1x128xf32, #tpu.memory_space<vmem>>, vector<1x128xf32>
      %22 = vector.broadcast %21 : vector<1x128xf32> to vector<16x128xf32>
      %23 = arith.addf %20, %22 : vector<16x128xf32>
      %cst_20 = arith.constant 0.000000e+00 : f32
      %24 = vector.broadcast %cst_20 : f32 to vector<16x128xf32>
      %25 = arith.maximumf %23, %24 : vector<16x128xf32>
      %c0_21 = arith.constant 0 : index
      %c0_22 = arith.constant 0 : index
      %26 = vector.load %arg7[%c0_21, %c0_22] : memref<16x128xf32, #tpu.memory_space<vmem>>, vector<16x128xf32>
      tpu.vector_store %arg7[%c0_21, %c0_22], %25 {strides = array<i32>} : memref<16x128xf32, #tpu.memory_space<vmem>>, vector<16x128xf32>,
    } else {
    }
    return
  }
  func.func @transform_0(%arg0: i32, %arg1: i32) -> (i32, i32) {
    %c0_i32 = arith.constant 0 : i32
    %c0_i32_0 = arith.constant 0 : i32
    return %arg0, %c0_i32 : i32, i32
  }
  func.func @transform_1(%arg0: i32, %arg1: i32) -> (i32, i32) {
    %c0_i32 = arith.constant 0 : i32
    %c0_i32_0 = arith.constant 0 : i32
    return %c0_i32, %arg1 : i32, i32
  }
  func.func @transform_2(%arg0: i32, %arg1: i32) -> (i32, i32) {
    %c0_i32 = arith.constant 0 : i32
    %c0_i32_0 = arith.constant 0 : i32
    return %c0_i32, %arg1 : i32, i32
  }
  func.func @transform_3(%arg0: i32, %arg1: i32) -> (i32, i32) {
    %c0_i32 = arith.constant 0 : i32
    %c0_i32_0 = arith.constant 0 : i32
    return %arg1, %c0_i32 : i32, i32
  }
  func.func @transform_4(%arg0: i32, %arg1: i32) -> (i32, i32) {
    %c0_i32 = arith.constant 0 : i32
    %c0_i32_0 = arith.constant 0 : i32
    %c0_i32_1 = arith.constant 0 : i32
    return %c0_i32, %c0_i32_0 : i32, i32
  }
  func.func @transform_5(%arg0: i32, %arg1: i32) -> (i32, i32) {
    %c0_i32 = arith.constant 0 : i32
    %c0_i32_0 = arith.constant 0 : i32
    return %arg0, %c0_i32 : i32, i32
  }
}

</mosaic_0001>

<bundles_post_ra>
// kernel: feed_forward.1
= control target key start
LH: loop header
LB: loop body
LE: loop exit
PB: predicated region body
PF: predicated region fallthrough
CT: control target
= control target key end

     0   :  { %10 = vsyncpa [#allocation4], 0  ;;  %s454_s0 = inlined_call_operand.vmem [shape: bf16[16,128], index: 0, kind: input, shape index: {}]   ;;  %s455_s1 = inlined_call_operand.hbm [shape: bf16[128,128], index: 1, kind: input, shape index: {}]   ;;  %s456_s2 = inlined_call_operand.vmem [shape: f32[1,128], index: 2, kind: input, shape index: {}]   ;;  %s457_s3 = inlined_call_operand.hbm [shape: bf16[128,128], index: 3, kind: input, shape index: {}]   ;;  %s458_s4 = inlined_call_operand.vmem [shape: f32[1,128], index: 4, kind: input, shape index: {}]   ;;  %s459_s5 = inlined_call_operand.vmem [shape: f32[16,128], index: 5, kind: output, shape index: {}]  }
   0x1   :  { %s18_s20 = sshll.u32 %s455_s1, 4  ;;  %s19_s20 = int_to_ptr.hbm [resolvable:$true] %s18_s20 }
   0x2   :  { %11 = vsyncpa [#allocation6], 0  ;;  %s399_s21 = smov [#allocation3]   ;;  %s33_s25 = sshll.u32 %s457_s3, 4  ;;  %s34_s25 = int_to_ptr.hbm [resolvable:$true] %s33_s25 }
   0x3   :  { %s20_s22 = sshll.u32 %s399_s21, 4  ;;  %s400_s26 = smov 64   ;;  %s21_s22 = int_to_ptr.vmem [resolvable:$true] %s20_s22 }
   0x4   :  { %s401_s27 = smov 4   ;;  %s402_s28 = smov [#allocation5]  }
   0x5   :  { %26 = dma.hbm_to_vmem [thread:$0]  %s19_s20, 1024, %s21_s22, [#allocation4], %s400_s26, %s400_s26, %s401_s27  }
   0x6   :  { %s35_s29 = sshll.u32 %s402_s28, 4  ;;  %s36_s29 = int_to_ptr.vmem [resolvable:$true] %s35_s29 }
   0x7   :  { %41 = dma.hbm_to_vmem [thread:$0]  %s34_s25, 1024, %s36_s29, [#allocation6], %s400_s26, %s400_s26, %s401_s27  }
   0x8   :  { %395 = dma.done.wait [#allocation4], 1024  }
   0x9   :  { %396 = vsyncadd [#allocation4], 4294966272 }
   0xa   :  { %397 = dma.done.wait [#allocation6], 1024  }
   0xb   :  { %398 = vsyncadd [#allocation6], 4294966272  ;;  %v332_v0 = vld [vmem:[#allocation3 + $0x38] sm:$0xff]  ;;  %v331_v1 = vld [vmem:[#allocation3 + $0x30] sm:$0xff] }
   0xc   :  { %134 = vmatpush.bf16.msra.mxu0 %v332_v0  ;;  %v340_v2 = vld [vmem:[#allocation5 + $0x38] sm:$0xff]  ;;  %v339_v3 = vld [vmem:[#allocation5 + $0x30] sm:$0xff]  ;;  %v330_v4 = vld [vmem:[#allocation3 + $0x28] sm:$0xff] }
   0xd   :  { %217 = vmatpush.bf16.msra.mxu1 %v340_v2  ;;  %v338_v5 = vld [vmem:[#allocation5 + $0x28] sm:$0xff]  ;;  %v329_v6 = vld [vmem:[#allocation3 + $0x20] sm:$0xff]  ;;  %v328_v8 = vld [vmem:[#allocation3 + $0x18] sm:$0xff] }
   0xe   :  { %v337_v7 = vld [vmem:[#allocation5 + $0x20] sm:$0xff]  ;;  %v327_v9 = vld [vmem:[#allocation3 + $0x10] sm:$0xff]  ;;  %v326_v10 = vld [vmem:[#allocation3 + $0x8] sm:$0xff] }
   0xf   :  { %v325_v11 = vld [vmem:[#allocation3] sm:$0xff]  ;;  %v336_v13 = vld [vmem:[#allocation5 + $0x18] sm:$0xff]  ;;  %v335_v14 = vld [vmem:[#allocation5 + $0x10] sm:$0xff] }
  0x10   :  { %135 = vmatpush.bf16.msra.mxu0 %v331_v1  ;;  %v324_v12 = vld [vmem:[%s454_s0] sm:$0xff]  ;;  %v334_v15 = vld [vmem:[#allocation5 + $0x8] sm:$0xff] }
  0x11   :  { %218 = vmatpush.bf16.msra.mxu1 %v339_v3  ;;  %v333_v16 = vld [vmem:[#allocation5] sm:$0xff] }
  0x12   :  { %v345_v18 = vld [vmem:[%s456_s2] ss:$0 sm:$0xff] }
  0x13   :  { %v346_v25 = vld [vmem:[%s458_s4] ss:$0 sm:$0xff] }
  0x14   :  { %136 = vmatpush.bf16.msra.mxu0 %v330_v4 }
  0x15   :  { %219 = vmatpush.bf16.msra.mxu1 %v338_v5 }
  0x18   :  { %137 = vmatpush.bf16.msra.mxu0 %v329_v6 }
  0x19   :  { %220 = vmatpush.bf16.msra.mxu1 %v337_v7 }
  0x1c   :  { %138 = vmatpush.bf16.msra.mxu0 %v328_v8 }
  0x1d   :  { %221 = vmatpush.bf16.msra.mxu1 %v336_v13 }
  0x20   :  { %139 = vmatpush.bf16.msra.mxu0 %v327_v9 }
  0x21   :  { %222 = vmatpush.bf16.msra.mxu1 %v335_v14 }
  0x24   :  { %140 = vmatpush.bf16.msra.mxu0 %v326_v10 }
  0x25   :  { %223 = vmatpush.bf16.msra.mxu1 %v334_v15 }
  0x28   :  { %141 = vmatpush.bf16.msra.mxu0 %v325_v11 }
  0x29   :  { %224 = vmatpush.bf16.msra.mxu1 %v333_v16 }
  0x2b   :  { %142 = vmatmul.bf16.vlgmr.msra.gmra.mxu0 %v324_v12 }
  0xa8   :  { %v143_v17 = vpop.f32.mrf.mxu0 }
  0xa9   :  { %v144_v19 = vadd.f32 %v345_v18, %v143_v17 }
  0xab   :  { %v148_v22 = vmax.f32 %v144_v19, 0.0 }
  0xb0   :  { %v145_v20 = vpop.f32.mrf.mxu0 }
  0xb1   :  { %v146_v21 = vadd.f32 %v345_v18, %v145_v20 }
  0xb3   :  { %v149_v23 = vmax.f32 %v146_v21, 0.0 }
  0xb5   :  { %v152_v24 = vpack.c.bf16 %v149_v23, %v148_v22 }
  0xb7   :  { %225 = vmatmul.bf16.vlgmr.msra.gmra.mxu1 %v152_v24 }
 0x134   :  { %v226_v26 = vpop.f32.mrf.mxu1 }
 0x135   :  { %v244_v27 = vadd.f32 %v346_v25, %v226_v26 }
 0x137   :  { %v246_v28 = vmax.f32 %v244_v27, 0.0 }
 0x139   :  { %248 = vst [vmem:[%s459_s5] sm:$0xff] %v246_v28 }
 0x13c   :  { %v228_v29 = vpop.f32.mrf.mxu1 }
 0x13d   :  { %v245_v30 = vadd.f32 %v346_v25, %v228_v29 }
 0x13f   :  { %v247_v31 = vmax.f32 %v245_v30, 0.0 }
 0x141   :  { %249 = vst [vmem:[%s459_s5 + $0x8] sm:$0xff] %v247_v31 }
 0x142   :  { %254 = vsyncpa [#allocation4], 1 }
 0x143   :  { %255 = vsyncpa [#allocation6], 1 }

</bundles_post_ra>
